<compile_context>
chip_gen: v7x
topology: tpu7x:2x2x1
jax: 0.10.0
libtpu: 0.0.40
codegen_flags: <defaults>
</compile_context>

<pallas_src>
import functools

import numpy as np
import jax
import jax.numpy as jnp
from jax import lax
from jax.experimental import pallas as pl
from jax.experimental.pallas import tpu as pltpu


def _round_up(x, m):
    return ((x + m - 1) // m) * m


def _vmem_capacity_bytes():
    try:
        return int(pltpu.get_tpu_info().vmem_capacity_bytes)
    except Exception:
        return 128 << 20


# --------------------------------------------------------------------------
# Kernel 1: inverse-sphere-distance sampling weights (row-tiled)
# --------------------------------------------------------------------------
def _sampling_weights_kernel(xb_ref, sq_row_ref, lab_row_ref, sq_col_ref, lab_col_ref,
                             q_ref, *, dim, tm, d2_floor):
    i = pl.program_id(0)
    start = pl.multiple_of(i * tm, tm)
    # Anchor tile sliced from the VMEM-resident bf16 batch (no second batch input).
    a = xb_ref[pl.ds(start, tm), :]                  # [tm, dim] bf16

    # Gram block on the MXU: contract the feature axis of both operands (no transpose).
    prod = lax.dot_general(
        a, xb_ref[...],
        dimension_numbers=(((1,), (1,)), ((), ())),
        preferred_element_type=jnp.float32)          # [tm, bs] f32

    sq_a = sq_col_ref[...]                           # [tm, 1] f32, precomputed
    sq_x = sq_row_ref[...]                           # [1, bs] f32, precomputed / resident

    # Reference p_dist: clamp(min=0) -> clamp(min=eps) -> sqrt; sampler clamps at cutoff.
    # Equivalently d^2 = max(res, max(eps, cutoff^2)); sqrt eliminated (log d = 0.5 log d2).
    res = jnp.maximum(sq_a + sq_x - 2.0 * prod, 0.0)
    d2 = jnp.maximum(res, d2_floor)

    # same-label mask built in-kernel from labels (no bs x bs host matrix).
    same = lab_col_ref[...] == lab_row_ref[...]      # [tm,1] == [1,bs] -> [tm,bs]

    dim_f = float(dim)
    # NOTE: log(1 - 0.25*d^2) is NaN for d > 2, exactly as in the reference;
    # the host then takes the "return 0.0 loss" fallback.
    log_q = (2.0 - dim_f) * 0.5 * jnp.log(d2) \
        - (dim_f - 3.0) * 0.5 * jnp.log(1.0 - 0.25 * d2)
    log_q = jnp.where(same, 0.0, log_q)              # zero same-label BEFORE row max
    log_q = log_q - jnp.max(log_q, axis=-1, keepdims=True)
    q = jnp.where(same, 0.0, jnp.exp(log_q))
    denom = jnp.sum(q, axis=-1, keepdims=True)
    q_ref[...] = q * pl.reciprocal(denom, approx=True)   # host renormalizes in f64


def _plan_sampling_tiles(bs, dim):
    """Pick an anchor-row tile (256-aligned where possible) sized from real VMEM."""
    vmem_cap = _vmem_capacity_bytes()
    budget = min(int(vmem_cap * 0.45), 56 << 20)      # v7x: 64 MiB physical -> ~28 MiB budget
    resident = bs * dim * 2 + 2 * bs * 4              # bf16 batch + sq/label rows
    per_row = 2 * (4 * bs + 8)                        # q out tile + sq/label cols, double-buffered
    cap = (budget - resident) // per_row
    cap = max(8, min(cap, bs))
    tm = None
    for align in (256, 128, 8):                       # fill the 2x256^2 MXU on v6e/v7x
        t = (cap // align) * align
        while t >= align:
            if bs % t == 0:
                tm = t
                break
            t -= align
        if tm is not None:
            break
    if tm is None:
        tm = bs                                       # small / odd batch: single tile
    work = resident + per_row * tm
    vmem_limit = int(min(max(work + (4 << 20), 16 << 20), min(vmem_cap // 2, 64 << 20)))
    return tm, vmem_limit


def sampling_weights(batch, labels_i32, *, cutoff=0.5, eps=1e-4):
    bs, dim = batch.shape
    tm, vmem_limit = _plan_sampling_tiles(bs, dim)
    grid = (bs // tm,)

    # Grid-invariant precomputation hoisted out of the kernel (done once by XLA):
    xb = batch.astype(jnp.bfloat16)                          # single bf16 cast of the batch
    sq = jnp.sum(batch.astype(jnp.float32) ** 2, axis=-1)    # squared norms
    sq_row = sq.reshape(1, bs)
    sq_col = sq.reshape(bs, 1)
    lab_row = labels_i32.reshape(1, bs)
    lab_col = labels_i32.reshape(bs, 1)

    d2_floor = float(max(eps, cutoff * cutoff))
    kern = functools.partial(_sampling_weights_kernel, dim=dim, tm=tm, d2_floor=d2_floor)
    return pl.pallas_call(
        kern,
        out_shape=jax.ShapeDtypeStruct((bs, bs), jnp.float32),
        grid=grid,
        in_specs=[
            pl.BlockSpec((bs, dim), lambda i: (0, 0)),   # bf16 batch, VMEM-resident
            pl.BlockSpec((1, bs), lambda i: (0, 0)),     # squared norms (row, resident)
            pl.BlockSpec((1, bs), lambda i: (0, 0)),     # labels (row, resident)
            pl.BlockSpec((tm, 1), lambda i: (i, 0)),     # squared norms (anchor column tile)
            pl.BlockSpec((tm, 1), lambda i: (i, 0)),     # labels (anchor column tile)
        ],
        out_specs=pl.BlockSpec((tm, bs), lambda i: (i, 0)),  # lane-dense q tile
        compiler_params=pltpu.CompilerParams(
            dimension_semantics=("parallel",),
            vmem_limit_bytes=vmem_limit,
        ),
    )(xb, sq_row, lab_row, sq_col, lab_col)


# --------------------------------------------------------------------------
# Kernel 2: triplet margin loss over TB-row tiles (dense blocks, XLA-side gathers)
# --------------------------------------------------------------------------
def _margin_loss_kernel(anc_ref, pos_ref, neg_ref, beta_ref, mask_ref,
                        out_ref, tot_ref, cnt_ref, *, margin):
    i = pl.program_id(0)

    @pl.when(i == 0)
    def _init():
        tot_ref[...] = jnp.zeros_like(tot_ref)
        cnt_ref[...] = jnp.zeros_like(cnt_ref)

    a = anc_ref[...].astype(jnp.float32)     # (TB, dim)
    p = pos_ref[...].astype(jnp.float32)
    n = neg_ref[...].astype(jnp.float32)

    dp = a - p
    dn = a - n
    d_ap = jnp.sqrt(jnp.sum(dp * dp, axis=-1, keepdims=True) + 1e-8)   # (TB, 1)
    d_an = jnp.sqrt(jnp.sum(dn * dn, axis=-1, keepdims=True) + 1e-8)   # (TB, 1)

    beta = beta_ref[...]                     # (TB, 1), gathered per anchor by XLA
    mask = mask_ref[...]                     # (TB, 1), 1.0 real / 0.0 pad rows

    pos_loss = jnp.maximum(d_ap - beta + margin, 0.0)   # F.relu
    neg_loss = jnp.maximum(beta - d_an + margin, 0.0)
    pair = (pos_loss + neg_loss) * mask
    # torch bool + bool == logical OR; both losses >= 0, so OR == (pos+neg) > 0.
    active = jnp.where(pair > 0.0, mask, 0.0)

    tot_ref[...] = tot_ref[...] + jnp.sum(pair, keepdims=True)
    cnt_ref[...] = cnt_ref[...] + jnp.sum(active, keepdims=True)

    @pl.when(i == pl.num_programs(0) - 1)
    def _finalize():
        tot = tot_ref[...]
        cnt = cnt_ref[...]
        den = jnp.maximum(cnt, 1.0)                       # cnt==0 -> tot==0 -> loss 0
        loss = jnp.where(cnt == 0.0, tot, tot / den)
        out_ref[0, 0] = loss[0, 0]


def _plan_triplet_tiles(bs, dim):
    tb = 256 if bs >= 256 else _round_up(bs, 8)
    pbs = _round_up(bs, tb)
    vmem_cap = _vmem_capacity_bytes()
    work = 2 * (3 * tb * dim * 4 + 2 * tb * 4) + (1 << 20)
    vmem_limit = int(min(max(work, 16 << 20), min(vmem_cap // 2, 64 << 20)))
    return tb, pbs, vmem_limit


def margin_loss(batch, pos_idx, neg_idx, labels_i32, beta_param, *, margin=0.2):
    bs, dim = batch.shape
    tb, pbs, vmem_limit = _plan_triplet_tiles(bs, dim)

    # Anchor == identity permutation; pos/neg rows and per-anchor beta gathered once by XLA.
    anc = batch
    pos = jnp.take(batch, pos_idx, axis=0)
    neg = jnp.take(batch, neg_idx, axis=0)
    beta = jnp.take(beta_param, labels_i32).astype(jnp.float32).reshape(bs, 1)

    pad = pbs - bs
    if pad:
        anc = jnp.pad(anc, ((0, pad), (0, 0)))
        pos = jnp.pad(pos, ((0, pad), (0, 0)))
        neg = jnp.pad(neg, ((0, pad), (0, 0)))
        beta = jnp.pad(beta, ((0, pad), (0, 0)))
    mask = (jnp.arange(pbs) < bs).astype(jnp.float32).reshape(pbs, 1)

    kern = functools.partial(_margin_loss_kernel, margin=float(margin))
    out = pl.pallas_call(
        kern,
        out_shape=jax.ShapeDtypeStruct((1, 1), jnp.float32),
        grid=(pbs // tb,),
        in_specs=[
            pl.BlockSpec((tb, dim), lambda i: (i, 0)),   # anchors (contiguous tile of batch)
            pl.BlockSpec((tb, dim), lambda i: (i, 0)),   # gathered positives
            pl.BlockSpec((tb, dim), lambda i: (i, 0)),   # gathered negatives
            pl.BlockSpec((tb, 1), lambda i: (i, 0)),     # per-anchor beta
            pl.BlockSpec((tb, 1), lambda i: (i, 0)),     # validity mask (padding)
        ],
        out_specs=pl.BlockSpec(memory_space=pltpu.SMEM),  # scalar loss
        scratch_shapes=[pltpu.VMEM((1, 1), jnp.float32),
                        pltpu.VMEM((1, 1), jnp.float32)],
        compiler_params=pltpu.CompilerParams(
            dimension_semantics=("arbitrary",),
            vmem_limit_bytes=vmem_limit,
        ),
    )(anc, pos, neg, beta, mask)
    return out[0, 0]


# --------------------------------------------------------------------------
# Host-side MarginLoss forward (sampling glue + kernel calls)
# --------------------------------------------------------------------------
def margin_loss_forward(batch, labels, beta_param, *, cutoff=0.5, margin=0.2):
    labels = np.asarray(labels)
    bs = batch.shape[0]
    labels_dev = jnp.asarray(labels.astype(np.int32))

    q = jax.block_until_ready(sampling_weights(batch, labels_dev, cutoff=cutoff))

    # Host-side triplet sampling, exactly as DistanceWeightedSampling.sample
    # (inherently host: np.random.choice). Reference returns 0.0 loss on NaN weights.
    q_np = np.asarray(q, dtype=np.float64)
    if np.any(np.isnan(q_np)):
        return jnp.float32(0.0)
    q_np = q_np / q_np.sum(axis=1, keepdims=True)   # exact normalization for np.random.choice
    np.random.seed(0)
    positives, negatives = [], []
    for i in range(bs):
        pos_mask = labels == labels[i]
        pos_mask[i] = False
        positives.append(int(np.random.choice(np.where(pos_mask)[0])))
        negatives.append(int(np.random.choice(bs, p=q_np[i])))

    pos_idx = jnp.asarray(np.asarray(positives, dtype=np.int32))
    neg_idx = jnp.asarray(np.asarray(negatives, dtype=np.int32))

    return margin_loss(batch, pos_idx, neg_idx, labels_dev,
                       beta_param.astype(jnp.float32), margin=margin)


if __name__ == "__main__":
    bs, dim, n_classes = 8, 32, 4
    beta_val, margin, cutoff = 1.2, 0.2, 0.5

    key = jax.random.PRNGKey(0)
    x = jax.random.normal(key, (bs, dim), dtype=jnp.float32)
    x = x / jnp.linalg.norm(x, axis=-1, keepdims=True)   # unit-norm embeddings

    labels = np.array([0, 0, 1, 1, 2, 2, 3, 3], dtype=np.int32)

    # deterministic parameter init: beta = ones(nClasses) * beta_val
    beta_param = jnp.ones((n_classes,), dtype=jnp.float32) * beta_val

    loss = margin_loss_forward(x, labels, beta_param, cutoff=cutoff, margin=margin)
    loss = jax.block_until_ready(loss)
    assert np.isfinite(float(loss))
    print("KERNEL_OK")
</pallas_src>

<mosaic_0001>
module attributes {stable_mosaic.version = 11 : i64} {
  func.func @_sampling_weights_kernel(%arg0: i32, %arg1: memref<8x32xbf16, #tpu.memory_space<vmem>>, %arg2: memref<1x8xf32, #tpu.memory_space<vmem>>, %arg3: memref<1x8xi32, #tpu.memory_space<vmem>>, %arg4: memref<8x1xf32, #tpu.memory_space<vmem>>, %arg5: memref<8x1xi32, #tpu.memory_space<vmem>>, %arg6: memref<8x8xf32, #tpu.memory_space<vmem>>) attributes {dimension_semantics = [#tpu.dimension_semantics<parallel>], iteration_bounds = array<i64: 1>, scalar_prefetch = 0 : i64, scratch_operands = 0 : i64, tpu.core_type = #tpu.core_type<tc>, window_params = [{pipeline_mode = #tpu.pipeline_mode<synchronous>, transform_indices = @transform_0, window_bounds = array<i64: 8, 32>}, {pipeline_mode = #tpu.pipeline_mode<synchronous>, transform_indices = @transform_1, window_bounds = array<i64: 1, 8>}, {pipeline_mode = #tpu.pipeline_mode<synchronous>, transform_indices = @transform_2, window_bounds = array<i64: 1, 8>}, {transform_indices = @transform_3, window_bounds = array<i64: 8, 1>}, {transform_indices = @transform_4, window_bounds = array<i64: 8, 1>}, {transform_indices = @transform_5, window_bounds = array<i64: 8, 8>}]} {
    %c8_i32 = arith.constant 8 : i32
    %0 = arith.muli %arg0, %c8_i32 : i32
    %1 = tpu.assume_multiple %0, 8 : i32
    %2 = arith.index_cast %1 : i32 to index
    %c0 = arith.constant 0 : index
    %3 = vector.load %arg1[%2, %c0] : memref<8x32xbf16, #tpu.memory_space<vmem>>, vector<8x32xbf16>
    %c0_0 = arith.constant 0 : index
    %c0_1 = arith.constant 0 : index
    %4 = vector.load %arg1[%c0_0, %c0_1] : memref<8x32xbf16, #tpu.memory_space<vmem>>, vector<8x32xbf16>
    %cst = arith.constant dense<0.000000e+00> : vector<8x8xf32>
    %5 = tpu.matmul %3, %4, %cst {dimension_numbers = #tpu.dot_dimension_numbers<[1], [1], [0], [0], [0, 0, 1, 0], [], []>} : vector<8x32xbf16>, vector<8x32xbf16>, vector<8x8xf32> -> vector<8x8xf32>
    %c0_2 = arith.constant 0 : index
    %c0_3 = arith.constant 0 : index
    %6 = vector.load %arg4[%c0_2, %c0_3] : memref<8x1xf32, #tpu.memory_space<vmem>>, vector<8x1xf32>
    %c0_4 = arith.constant 0 : index
    %c0_5 = arith.constant 0 : index
    %7 = vector.load %arg2[%c0_4, %c0_5] : memref<1x8xf32, #tpu.memory_space<vmem>>, vector<1x8xf32>
    %8 = vector.broadcast %6 : vector<8x1xf32> to vector<8x8xf32>
    %9 = vector.broadcast %7 : vector<1x8xf32> to vector<8x8xf32>
    %10 = arith.addf %8, %9 : vector<8x8xf32>
    %cst_6 = arith.constant 2.000000e+00 : f32
    %11 = vector.broadcast %cst_6 : f32 to vector<8x8xf32>
    %12 = arith.mulf %11, %5 : vector<8x8xf32>
    %13 = arith.subf %10, %12 : vector<8x8xf32>
    %cst_7 = arith.constant 0.000000e+00 : f32
    %14 = vector.broadcast %cst_7 : f32 to vector<8x8xf32>
    %15 = arith.maximumf %13, %14 : vector<8x8xf32>
    %cst_8 = arith.constant 2.500000e-01 : f32
    %16 = vector.broadcast %cst_8 : f32 to vector<8x8xf32>
    %17 = arith.maximumf %15, %16 : vector<8x8xf32>
    %c0_9 = arith.constant 0 : index
    %c0_10 = arith.constant 0 : index
    %18 = vector.load %arg5[%c0_9, %c0_10] : memref<8x1xi32, #tpu.memory_space<vmem>>, vector<8x1xi32>
    %c0_11 = arith.constant 0 : index
    %c0_12 = arith.constant 0 : index
    %19 = vector.load %arg3[%c0_11, %c0_12] : memref<1x8xi32, #tpu.memory_space<vmem>>, vector<1x8xi32>
    %20 = vector.broadcast %18 : vector<8x1xi32> to vector<8x8xi32>
    %21 = vector.broadcast %19 : vector<1x8xi32> to vector<8x8xi32>
    %22 = arith.cmpi eq, %20, %21 : vector<8x8xi32>
    %23 = math.log %17 : vector<8x8xf32>
    %cst_13 = arith.constant -1.500000e+01 : f32
    %24 = vector.broadcast %cst_13 : f32 to vector<8x8xf32>
    %25 = arith.mulf %24, %23 : vector<8x8xf32>
    %cst_14 = arith.constant 2.500000e-01 : f32
    %26 = vector.broadcast %cst_14 : f32 to vector<8x8xf32>
    %27 = arith.mulf %26, %17 : vector<8x8xf32>
    %cst_15 = arith.constant 1.000000e+00 : f32
    %28 = vector.broadcast %cst_15 : f32 to vector<8x8xf32>
    %29 = arith.subf %28, %27 : vector<8x8xf32>
    %30 = math.log %29 : vector<8x8xf32>
    %cst_16 = arith.constant 1.450000e+01 : f32
    %31 = vector.broadcast %cst_16 : f32 to vector<8x8xf32>
    %32 = arith.mulf %31, %30 : vector<8x8xf32>
    %33 = arith.subf %25, %32 : vector<8x8xf32>
    %cst_17 = arith.constant 0.000000e+00 : f32
    %34 = vector.broadcast %cst_17 : f32 to vector<8x8xf32>
    %35 = arith.select %22, %34, %33 : vector<8x8xi1>, vector<8x8xf32>
    %cst_18 = arith.constant dense<0xFF800000> : vector<8xf32>
    %36 = vector.multi_reduction <maximumf>, %35, %cst_18 [1] : vector<8x8xf32> to vector<8xf32>
    %37 = vector.shape_cast %36 : vector<8xf32> to vector<8x1xf32>
    %38 = vector.broadcast %37 : vector<8x1xf32> to vector<8x8xf32>
    %39 = arith.subf %35, %38 : vector<8x8xf32>
    %40 = math.exp %39 : vector<8x8xf32>
    %cst_19 = arith.constant 0.000000e+00 : f32
    %41 = vector.broadcast %cst_19 : f32 to vector<8x8xf32>
    %42 = arith.select %22, %41, %40 : vector<8x8xi1>, vector<8x8xf32>
    %cst_20 = arith.constant dense<0.000000e+00> : vector<8xf32>
    %43 = vector.multi_reduction <add>, %42, %cst_20 [1] : vector<8x8xf32> to vector<8xf32>
    %44 = vector.shape_cast %43 : vector<8xf32> to vector<8x1xf32>
    %45 = tpu.reciprocal %44 {approx = true} : vector<8x1xf32> -> vector<8x1xf32>
    %46 = vector.broadcast %45 : vector<8x1xf32> to vector<8x8xf32>
    %47 = arith.mulf %42, %46 : vector<8x8xf32>
    %c0_21 = arith.constant 0 : index
    %c0_22 = arith.constant 0 : index
    %48 = vector.load %arg6[%c0_21, %c0_22] : memref<8x8xf32, #tpu.memory_space<vmem>>, vector<8x8xf32>
    tpu.vector_store %arg6[%c0_21, %c0_22], %47 {strides = array<i32>} : memref<8x8xf32, #tpu.memory_space<vmem>>, vector<8x8xf32>,
    return
  }
  func.func @transform_0(%arg0: i32) -> (i32, i32) {
    %c0_i32 = arith.constant 0 : i32
    %c0_i32_0 = arith.constant 0 : i32
    %c0_i32_1 = arith.constant 0 : i32
    return %c0_i32, %c0_i32_0 : i32, i32
  }
  func.func @transform_1(%arg0: i32) -> (i32, i32) {
    %c0_i32 = arith.constant 0 : i32
    %c0_i32_0 = arith.constant 0 : i32
    %c0_i32_1 = arith.constant 0 : i32
    return %c0_i32, %c0_i32_0 : i32, i32
  }
  func.func @transform_2(%arg0: i32) -> (i32, i32) {
    %c0_i32 = arith.constant 0 : i32
    %c0_i32_0 = arith.constant 0 : i32
    %c0_i32_1 = arith.constant 0 : i32
    return %c0_i32, %c0_i32_0 : i32, i32
  }
  func.func @transform_3(%arg0: i32) -> (i32, i32) {
    %c0_i32 = arith.constant 0 : i32
    %c0_i32_0 = arith.constant 0 : i32
    return %arg0, %c0_i32 : i32, i32
  }
  func.func @transform_4(%arg0: i32) -> (i32, i32) {
    %c0_i32 = arith.constant 0 : i32
    %c0_i32_0 = arith.constant 0 : i32
    return %arg0, %c0_i32 : i32, i32
  }
  func.func @transform_5(%arg0: i32) -> (i32, i32) {
    %c0_i32 = arith.constant 0 : i32
    %c0_i32_0 = arith.constant 0 : i32
    return %arg0, %c0_i32 : i32, i32
  }
}

</mosaic_0001>

<bundles_post_ra>
// kernel: tpu_custom_call.1
= control target key start
LH: loop header
LB: loop body
LE: loop exit
PB: predicated region body
PF: predicated region fallthrough
CT: control target
= control target key end

     0   :  { %vm29_vm0 = vcmask 261120   ;;  %v192_v1 = vmov 0.0   ;;  %vm193_vm1 = vmmov 0   ;;  %v194_v4 = vmov 0   ;;  %s259_s0 = inlined_call_operand.vmem [shape: bf16[8,32], index: 0, kind: input, shape index: {}]   ;;  %s260_s1 = inlined_call_operand.vmem [shape: f32[1,8], index: 1, kind: input, shape index: {}]   ;;  %s261_s2 = inlined_call_operand.vmem [shape: s32[1,8], index: 2, kind: input, shape index: {}]   ;;  %s262_s3 = inlined_call_operand.vmem [shape: f32[8,1], index: 3, kind: input, shape index: {}]   ;;  %s263_s4 = inlined_call_operand.vmem [shape: s32[8,1], index: 4, kind: input, shape index: {}]   ;;  %s264_s5 = inlined_call_operand.hbm [shape: f32[8,8], index: 5, kind: output, shape index: {}]  }
   0x1   :  { %v28_v0 = vld [vmem:[%s259_s0] sm:$0xf]  ;;  %149 = vmatprep.subr.bf16.mxu0 %v192_v1  ;;  %151 = vmatprep.mubr.msk.bf16.mxu0 %vm193_vm1, %v192_v1 }
   0x2   :  { %v34_v2 = vsel %vm29_vm0, %v28_v0, 0  ;;  %v76_v3 = vld [vmem:[%s262_s3] sm:$0xff]  ;;  %159 = vset.pattern.permute.xlu0 %v194_v4 }
   0x3   :  { %150 = vmatpush3.bf16.xpose.msra.mxu0 %v34_v2 }
   0x4   :  { %10 = vsyncpa [#allocation3], 0  ;;  %80 = vperm.xlu0 %159, %v76_v3   ;;  %v94_v5 = vld [vmem:[%s263_s4] sm:$0xff]  ;;  %vm114_vm2 = vcmask 64512  }
   0x5   :  { %v27_v6 = vld [vmem:[%s259_s0] sm:$0xf] }
   0x6   :  { %v145_v7 = vld [vmem:[%s260_s1] ss:$0 sm:$0xff] }
   0x7   :  { %v146_v24 = vld [vmem:[%s261_s2] ss:$0 sm:$0xff]  ;;  %s195_s2 = smov [#allocation2]  }
   0x8   :  { %97 = vperm.xlu0 %159, %v94_v5   ;;  %s134_s3 = sshll.u32 %s195_s2, 4  ;;  %s135_s3 = int_to_ptr.vmem [resolvable:$true] %s134_s3 }
   0x9   :  { %s168_s4 = scalar_lea.vmem %s135_s3, 128  ;;  %p173_p1 = scmp.lt.s32.totalorder %s135_s3, %s135_s3 }
   0xa   :  { %152 = vmatmul.mubr.msk.bf16.vlgmr.msra.gmra.mrb[0].mxu0 %vm29_vm0, %v27_v6  ;;  %p169_p0 = scmp.ne.s32.totalorder %s135_s3, %s168_s4  ;;  %p174_p2 = scmp.lt.s32.totalorder %s168_s4, %s168_s4 }
   0xc   :  { %p175_p3 = por %p174_p2, %p173_p1 }
   0xe   :  { %p176_p4 = pnand %p175_p3, %p169_p0 }
  0x83   :  { %v81_v8 = vpop.permute.xlu0 %80 }
  0x84   :  { %v89_v9 = vadd.f32 %v145_v7, %v81_v8 }
  0x87   :  { %v98_v25 = vpop.permute.xlu0 %97 }
  0x88   :  { %vm103_vm3 = vcmp.eq.s32.totalorder %v98_v25, %v146_v24 }
  0xdd   :  { %v70_v10 = vpop.f32.mrb[0].mxu0 }
  0xde   :  { %v90_v11 = vmul.f32 2.0, %v70_v10  ;;  %v153_v12 = vpop.f32.mrb[1].mxu0 }
  0xdf   :  { %v73_v13 = vpop.f32.mrb[2].mxu0 }
  0xe0   :  { %v91_v14 = vsub.f32 %v89_v9, %v90_v11  ;;  %v154_v15 = vpop.f32.mrb[3].mxu0 }
  0xe2   :  { %v92_v16 = vmax.f32 %v91_v14, 0.0 }
  0xe4   :  { %v93_v17 = vmax.f32 %v92_v16, 0.25 }
  0xe6   :  { %160 = vlog2.f32 %v93_v17  ;;  %v107_v18 = vmul.f32 0.25, %v93_v17 }
  0xe8   :  { %v108_v19 = vsub.f32 1.0, %v107_v18 }
  0xea   :  { %162 = vlog2.f32 %v108_v19 }
  0xf0   :  { %v161_v20 = vpop.eup %160 }
  0xf1   :  { %v105_v21 = vmul.f32 0.6931472, %v161_v20 }
  0xf3   :  { %v106_v26 = vmul.f32 -15.0, %v105_v21 }
  0xf4   :  { %v163_v22 = vpop.eup %162 }
  0xf5   :  { %v110_v23 = vmul.f32 0.6931472, %v163_v22 }
  0xf7   :  { %v111_v27 = vmul.f32 14.5, %v110_v23 }
  0xf9   :  { %v112_v28 = vsub.f32 %v106_v26, %v111_v27 }
  0xfb   :  { %v113_v29 = vsel %vm103_vm3, 0.0, %v112_v28 }
  0xfc   :  { %v115_v30 = vsel %vm114_vm2, %v113_v29, -inf }
  0xfd   :  { %116 = vmax.xlane.f32.xlu1 %v115_v30 }
 0x18a   :  { %v117_v31 = vpop.xlane.xlu1 %116 }
 0x18b   :  { %v118_v32 = vsub.f32 %v113_v29, %v117_v31 }
 0x18d   :  { %v119_v33 = vmul.f32 1.442695, %v118_v32 }
 0x18f   :  { %164 = vpow2.f32 %v119_v33 }
 0x199   :  { %v165_v34 = vpop.eup %164 }
 0x19a   :  { %v121_v35 = vsel %vm103_vm3, 0.0, %v165_v34 }
 0x19b   :  { %v122_v36 = vsel %vm114_vm2, %v121_v35, 0.0 }
 0x19c   :  { %123 = vadd.xlane.f32.xlu1 %v122_v36 }
 0x229   :  { %v124_v37 = vpop.xlane.xlu1 %123 }
 0x22a   :  { %166 = vrcp.f32 %v124_v37 }
 0x234   :  { %v167_v38 = vpop.eup %166 }
 0x235   :  { %v126_v39 = vmul.f32 %v167_v38, %v121_v35 }
 0x237   :  { %127 = vst.msk [vmem:[#allocation2] sm:$0xff] %vm114_vm2, %v126_v39 }
 0x238   :  { %179 = shalt.err (!%p176_p4)
}
 0x239   :  { %s180_s30 = scalar_lea.hbm %s264_s5, 128 }
 0x23a   :  { %p181_p5 = scmp.ne.s32.totalorder %s264_s5, %s180_s30  ;;  %p184_p6 = scmp.lt.u32.totalorder %s180_s30, %s264_s5 }
 0x23c   :  { %p186_p7 = pnand %p184_p6, %p181_p5 }
 0x23e   :  { %189 = shalt.err (!%p186_p7)
}
 0x23f   :  { %137 = dma.vmem_to_hbm [thread:$0]  %s135_s3, 128, %s264_s5, [#allocation3]  }
 0x240   :  { %190 = dma.done.wait [#allocation3], 128  }
 0x241   :  { %191 = vsyncadd [#allocation3], 4294967168 }
 0x242   :  { %141 = vsyncpa [#allocation3], 1 }

</bundles_post_ra>
